<compile_context>
chip_gen: v7x
topology: tpu7x:2x2x1
jax: 0.10.0
libtpu: 0.0.40
codegen_flags: <defaults>
</compile_context>

<pallas_src>
import jax
import jax.numpy as jnp
from jax import lax
from jax.experimental import pallas as pl
from jax.experimental.pallas import tpu as pltpu

N_STATE = 1
N_HIDDEN = 10
N_ACTIONS = 2

LANE = 128
SUBLANE = 8


def _round_up(v, m):
    return (v + m - 1) // m * m


def _choose_tiling(rows_needed, max_block_rows):
    """Pick (block_rows, strip) for a lane-major batch of `rows_needed` rows."""
    # Guarantee >= 2 grid steps when there is enough work so the "parallel"
    # grid axis can use both v7x TensorCores.
    if rows_needed > 2 * SUBLANE:
        target = -(-rows_needed // 2)
    else:
        target = rows_needed
    align = 32 if target >= 32 else SUBLANE
    block_rows = min(max_block_rows, _round_up(target, align))
    # In-kernel strip size: bounds the live vreg set (~5 operands/strip).
    strip = next(s for s in (32, 16, 8) if block_rows % s == 0)
    return block_rows, strip


def _make_net_kernel(block_rows, strip):
    """Build the VPU-only forward kernel for one (block_rows, 128) batch tile.

    x_ref:   (block_rows, 128)        f32 VMEM  - batch elements, lane-dense
    w1_ref:  (N_HIDDEN,)              f32 SMEM  - fc1 weight (N_STATE == 1)
    b1_ref:  (N_HIDDEN,)              f32 SMEM
    w2_ref:  (N_HIDDEN*N_ACTIONS,)    f32 SMEM  - row-major [hidden, action]
    b2_ref:  (N_ACTIONS,)             f32 SMEM
    out_ref: (N_ACTIONS, block_rows, 128) f32 VMEM - lane-dense output slabs
    """
    assert block_rows % strip == 0
    n_strips = block_rows // strip

    def kernel(x_ref, w1_ref, b1_ref, w2_ref, b2_ref, out_ref):
        # Pull the ~34 parameter scalars out of SMEM once per grid step
        # (not once per strip).
        w1 = [w1_ref[j] for j in range(N_HIDDEN)]
        b1 = [b1_ref[j] for j in range(N_HIDDEN)]
        w2 = [[w2_ref[j * N_ACTIONS + a] for a in range(N_ACTIONS)]
              for j in range(N_HIDDEN)]
        b2 = [b2_ref[a] for a in range(N_ACTIONS)]

        def strip_body(s, carry):
            r0 = s * strip
            if not isinstance(r0, int):
                r0 = pl.multiple_of(r0, strip)
            x = x_ref[pl.ds(r0, strip), :]
            # j == 0: fold the output bias into the first MAC (saves a
            # full-strip splat + add per action on the VALU slot).
            h = jnp.maximum(x * w1[0] + b1[0], 0.0)
            acc = [h * w2[0][a] + b2[a] for a in range(N_ACTIONS)]
            for j in range(1, N_HIDDEN):
                h = jnp.maximum(x * w1[j] + b1[j], 0.0)  # relu(fc1(x))[:, j]
                for a in range(N_ACTIONS):
                    acc[a] = acc[a] + h * w2[j][a]
            for a in range(N_ACTIONS):
                out_ref[a, pl.ds(r0, strip), :] = acc[a]
            return carry

        if n_strips == 1:
            strip_body(0, 0)
        else:
            lax.fori_loop(0, n_strips, strip_body, 0, unroll=2)

    return kernel


def net_forward_lane_major(x, w1, b1, w2, b2, *, max_block_rows=2048):
    """Forward pass of Net; returns (N_ACTIONS, B) float32 (no final transpose).

    x:  (B, N_STATE) float32
    w1: (N_STATE, N_HIDDEN)   b1: (N_HIDDEN,)
    w2: (N_HIDDEN, N_ACTIONS) b2: (N_ACTIONS,)
    """
    assert max_block_rows >= SUBLANE and max_block_rows % SUBLANE == 0
    B = x.shape[0]
    assert x.shape == (B, N_STATE)
    xf = x.reshape(B).astype(jnp.float32)

    rows_needed = max(1, -(-B // LANE))
    block_rows, strip = _choose_tiling(rows_needed, max_block_rows)
    R = _round_up(rows_needed, block_rows)
    Bp = R * LANE
    # Note: callers that can supply x already laid out as (R, 128) skip this
    # pad+reshape HBM pass entirely; it's kept here to accept (B, 1) inputs.
    x2 = jnp.pad(xf, (0, Bp - B)).reshape(R, LANE)

    # Flatten the ~34 parameter scalars for SMEM residency.
    w1f = w1.reshape(N_HIDDEN).astype(jnp.float32)
    b1f = b1.reshape(N_HIDDEN).astype(jnp.float32)
    w2f = w2.reshape(N_HIDDEN * N_ACTIONS).astype(jnp.float32)  # [hidden, action]
    b2f = b2.reshape(N_ACTIONS).astype(jnp.float32)

    smem = pl.BlockSpec(memory_space=pltpu.MemorySpace.SMEM)
    out3 = pl.pallas_call(
        _make_net_kernel(block_rows, strip),
        out_shape=jax.ShapeDtypeStruct((N_ACTIONS, R, LANE), jnp.float32),
        grid=(R // block_rows,),
        in_specs=[
            pl.BlockSpec((block_rows, LANE), lambda i: (i, 0)),  # x tile (pipelined)
            smem, smem, smem, smem,                              # params pinned in SMEM
        ],
        out_specs=pl.BlockSpec((N_ACTIONS, block_rows, LANE), lambda i: (0, i, 0)),
        compiler_params=pltpu.CompilerParams(
            dimension_semantics=("parallel",),
        ),
    )(x2, w1f, b1f, w2f, b2f)

    # (N_ACTIONS, R, 128) -> (N_ACTIONS, Bp) -> strip padding.
    return out3.reshape(N_ACTIONS, Bp)[:, :B]


def net_forward(x, w1, b1, w2, b2, *, max_block_rows=2048):
    """PyTorch-shaped output (B, N_ACTIONS) == relu(x @ w1 + b1) @ w2 + b2.

    Prefer `net_forward_lane_major` in hot DQN loops: the final (2, B) ->
    (B, 2) transpose is an extra, un-hidden, lane-hostile HBM pass.
    """
    return net_forward_lane_major(
        x, w1, b1, w2, b2, max_block_rows=max_block_rows).T


def init_params(key):
    """Mirror the PyTorch module init: weights ~ Normal(0, 0.1); biases use the
    nn.Linear default U(-1/sqrt(fan_in), 1/sqrt(fan_in))."""
    k1, k2, k3, k4 = jax.random.split(key, 4)
    w1 = 0.1 * jax.random.normal(k1, (N_STATE, N_HIDDEN), dtype=jnp.float32)
    b1 = jax.random.uniform(
        k2, (N_HIDDEN,), minval=-1.0 / jnp.sqrt(N_STATE), maxval=1.0 / jnp.sqrt(N_STATE),
        dtype=jnp.float32)
    w2 = 0.1 * jax.random.normal(k3, (N_HIDDEN, N_ACTIONS), dtype=jnp.float32)
    b2 = jax.random.uniform(
        k4, (N_ACTIONS,), minval=-1.0 / jnp.sqrt(N_HIDDEN), maxval=1.0 / jnp.sqrt(N_HIDDEN),
        dtype=jnp.float32)
    return w1, b1, w2, b2


def _reference(x, w1, b1, w2, b2):
    return jnp.maximum(x @ w1 + b1, 0.0) @ w2 + b2


if __name__ == "__main__":
    key = jax.random.PRNGKey(0)
    k_x, k_x2, k_p = jax.random.split(key, 3)
    w1, b1, w2, b2 = init_params(k_p)

    # Small batch of states (typical DQN action-selection batch): grid=(1,).
    B = 8
    x = jax.random.normal(k_x, (B, N_STATE), dtype=jnp.float32)
    out = jax.block_until_ready(net_forward(x, w1, b1, w2, b2))
    ref = _reference(x, w1, b1, w2, b2)
    assert out.shape == (B, N_ACTIONS)
    assert jnp.allclose(out, ref, atol=1e-5, rtol=1e-5)

    # Multi-step grid (>= 2 "parallel" steps so v7x uses both TCs) + padding,
    # lane-major output path (no final transpose).
    B2 = 2500
    x2 = jax.random.normal(k_x2, (B2, N_STATE), dtype=jnp.float32)
    out2 = jax.block_until_ready(net_forward_lane_major(x2, w1, b1, w2, b2))
    ref2 = _reference(x2, w1, b1, w2, b2).T
    assert out2.shape == (N_ACTIONS, B2)
    assert jnp.allclose(out2, ref2, atol=1e-5, rtol=1e-5)

    # Larger batch: exercises the in-kernel strip loop (n_strips > 1) and
    # multiple grid steps with the default tile chooser.
    B3 = 40_000
    x3 = jax.random.normal(jax.random.PRNGKey(3), (B3, N_STATE), dtype=jnp.float32)
    out3 = jax.block_until_ready(net_forward(x3, w1, b1, w2, b2))
    ref3 = _reference(x3, w1, b1, w2, b2)
    assert out3.shape == (B3, N_ACTIONS)
    assert jnp.allclose(out3, ref3, atol=1e-5, rtol=1e-5)

    print("KERNEL_OK")
</pallas_src>

<mosaic_0001>
module attributes {stable_mosaic.version = 11 : i64} {
  func.func @kernel(%arg0: i32, %arg1: memref<8x128xf32, #tpu.memory_space<vmem>>, %arg2: memref<10xf32, #tpu.memory_space<smem>>, %arg3: memref<10xf32, #tpu.memory_space<smem>>, %arg4: memref<20xf32, #tpu.memory_space<smem>>, %arg5: memref<2xf32, #tpu.memory_space<smem>>, %arg6: memref<2x8x128xf32, #tpu.memory_space<vmem>>) attributes {dimension_semantics = [#tpu.dimension_semantics<parallel>], iteration_bounds = array<i64: 1>, scalar_prefetch = 0 : i64, scratch_operands = 0 : i64, tpu.core_type = #tpu.core_type<tc>, window_params = [{transform_indices = @transform_0, window_bounds = array<i64: 8, 128>}, {transform_indices = @transform_1, window_bounds = array<i64: 10>}, {transform_indices = @transform_2, window_bounds = array<i64: 10>}, {transform_indices = @transform_3, window_bounds = array<i64: 20>}, {transform_indices = @transform_4, window_bounds = array<i64: 2>}, {transform_indices = @transform_5, window_bounds = array<i64: 2, 8, 128>}]} {
    %c0 = arith.constant 0 : index
    %0 = memref.load %arg2[%c0] : memref<10xf32, #tpu.memory_space<smem>>
    %c1 = arith.constant 1 : index
    %1 = memref.load %arg2[%c1] : memref<10xf32, #tpu.memory_space<smem>>
    %c2 = arith.constant 2 : index
    %2 = memref.load %arg2[%c2] : memref<10xf32, #tpu.memory_space<smem>>
    %c3 = arith.constant 3 : index
    %3 = memref.load %arg2[%c3] : memref<10xf32, #tpu.memory_space<smem>>
    %c4 = arith.constant 4 : index
    %4 = memref.load %arg2[%c4] : memref<10xf32, #tpu.memory_space<smem>>
    %c5 = arith.constant 5 : index
    %5 = memref.load %arg2[%c5] : memref<10xf32, #tpu.memory_space<smem>>
    %c6 = arith.constant 6 : index
    %6 = memref.load %arg2[%c6] : memref<10xf32, #tpu.memory_space<smem>>
    %c7 = arith.constant 7 : index
    %7 = memref.load %arg2[%c7] : memref<10xf32, #tpu.memory_space<smem>>
    %c8 = arith.constant 8 : index
    %8 = memref.load %arg2[%c8] : memref<10xf32, #tpu.memory_space<smem>>
    %c9 = arith.constant 9 : index
    %9 = memref.load %arg2[%c9] : memref<10xf32, #tpu.memory_space<smem>>
    %c0_0 = arith.constant 0 : index
    %10 = memref.load %arg3[%c0_0] : memref<10xf32, #tpu.memory_space<smem>>
    %c1_1 = arith.constant 1 : index
    %11 = memref.load %arg3[%c1_1] : memref<10xf32, #tpu.memory_space<smem>>
    %c2_2 = arith.constant 2 : index
    %12 = memref.load %arg3[%c2_2] : memref<10xf32, #tpu.memory_space<smem>>
    %c3_3 = arith.constant 3 : index
    %13 = memref.load %arg3[%c3_3] : memref<10xf32, #tpu.memory_space<smem>>
    %c4_4 = arith.constant 4 : index
    %14 = memref.load %arg3[%c4_4] : memref<10xf32, #tpu.memory_space<smem>>
    %c5_5 = arith.constant 5 : index
    %15 = memref.load %arg3[%c5_5] : memref<10xf32, #tpu.memory_space<smem>>
    %c6_6 = arith.constant 6 : index
    %16 = memref.load %arg3[%c6_6] : memref<10xf32, #tpu.memory_space<smem>>
    %c7_7 = arith.constant 7 : index
    %17 = memref.load %arg3[%c7_7] : memref<10xf32, #tpu.memory_space<smem>>
    %c8_8 = arith.constant 8 : index
    %18 = memref.load %arg3[%c8_8] : memref<10xf32, #tpu.memory_space<smem>>
    %c9_9 = arith.constant 9 : index
    %19 = memref.load %arg3[%c9_9] : memref<10xf32, #tpu.memory_space<smem>>
    %c0_10 = arith.constant 0 : index
    %20 = memref.load %arg4[%c0_10] : memref<20xf32, #tpu.memory_space<smem>>
    %c1_11 = arith.constant 1 : index
    %21 = memref.load %arg4[%c1_11] : memref<20xf32, #tpu.memory_space<smem>>
    %c2_12 = arith.constant 2 : index
    %22 = memref.load %arg4[%c2_12] : memref<20xf32, #tpu.memory_space<smem>>
    %c3_13 = arith.constant 3 : index
    %23 = memref.load %arg4[%c3_13] : memref<20xf32, #tpu.memory_space<smem>>
    %c4_14 = arith.constant 4 : index
    %24 = memref.load %arg4[%c4_14] : memref<20xf32, #tpu.memory_space<smem>>
    %c5_15 = arith.constant 5 : index
    %25 = memref.load %arg4[%c5_15] : memref<20xf32, #tpu.memory_space<smem>>
    %c6_16 = arith.constant 6 : index
    %26 = memref.load %arg4[%c6_16] : memref<20xf32, #tpu.memory_space<smem>>
    %c7_17 = arith.constant 7 : index
    %27 = memref.load %arg4[%c7_17] : memref<20xf32, #tpu.memory_space<smem>>
    %c8_18 = arith.constant 8 : index
    %28 = memref.load %arg4[%c8_18] : memref<20xf32, #tpu.memory_space<smem>>
    %c9_19 = arith.constant 9 : index
    %29 = memref.load %arg4[%c9_19] : memref<20xf32, #tpu.memory_space<smem>>
    %c10 = arith.constant 10 : index
    %30 = memref.load %arg4[%c10] : memref<20xf32, #tpu.memory_space<smem>>
    %c11 = arith.constant 11 : index
    %31 = memref.load %arg4[%c11] : memref<20xf32, #tpu.memory_space<smem>>
    %c12 = arith.constant 12 : index
    %32 = memref.load %arg4[%c12] : memref<20xf32, #tpu.memory_space<smem>>
    %c13 = arith.constant 13 : index
    %33 = memref.load %arg4[%c13] : memref<20xf32, #tpu.memory_space<smem>>
    %c14 = arith.constant 14 : index
    %34 = memref.load %arg4[%c14] : memref<20xf32, #tpu.memory_space<smem>>
    %c15 = arith.constant 15 : index
    %35 = memref.load %arg4[%c15] : memref<20xf32, #tpu.memory_space<smem>>
    %c16 = arith.constant 16 : index
    %36 = memref.load %arg4[%c16] : memref<20xf32, #tpu.memory_space<smem>>
    %c17 = arith.constant 17 : index
    %37 = memref.load %arg4[%c17] : memref<20xf32, #tpu.memory_space<smem>>
    %c18 = arith.constant 18 : index
    %38 = memref.load %arg4[%c18] : memref<20xf32, #tpu.memory_space<smem>>
    %c19 = arith.constant 19 : index
    %39 = memref.load %arg4[%c19] : memref<20xf32, #tpu.memory_space<smem>>
    %c0_20 = arith.constant 0 : index
    %40 = memref.load %arg5[%c0_20] : memref<2xf32, #tpu.memory_space<smem>>
    %c1_21 = arith.constant 1 : index
    %41 = memref.load %arg5[%c1_21] : memref<2xf32, #tpu.memory_space<smem>>
    %c0_22 = arith.constant 0 : index
    %c0_23 = arith.constant 0 : index
    %42 = vector.load %arg1[%c0_22, %c0_23] : memref<8x128xf32, #tpu.memory_space<vmem>>, vector<8x128xf32>
    %43 = vector.broadcast %0 : f32 to vector<8x128xf32>
    %44 = arith.mulf %42, %43 : vector<8x128xf32>
    %45 = vector.broadcast %10 : f32 to vector<8x128xf32>
    %46 = arith.addf %44, %45 : vector<8x128xf32>
    %cst = arith.constant 0.000000e+00 : f32
    %47 = vector.broadcast %cst : f32 to vector<8x128xf32>
    %48 = arith.maximumf %46, %47 : vector<8x128xf32>
    %49 = vector.broadcast %20 : f32 to vector<8x128xf32>
    %50 = arith.mulf %48, %49 : vector<8x128xf32>
    %51 = vector.broadcast %40 : f32 to vector<8x128xf32>
    %52 = arith.addf %50, %51 : vector<8x128xf32>
    %53 = vector.broadcast %21 : f32 to vector<8x128xf32>
    %54 = arith.mulf %48, %53 : vector<8x128xf32>
    %55 = vector.broadcast %41 : f32 to vector<8x128xf32>
    %56 = arith.addf %54, %55 : vector<8x128xf32>
    %57 = vector.broadcast %1 : f32 to vector<8x128xf32>
    %58 = arith.mulf %42, %57 : vector<8x128xf32>
    %59 = vector.broadcast %11 : f32 to vector<8x128xf32>
    %60 = arith.addf %58, %59 : vector<8x128xf32>
    %cst_24 = arith.constant 0.000000e+00 : f32
    %61 = vector.broadcast %cst_24 : f32 to vector<8x128xf32>
    %62 = arith.maximumf %60, %61 : vector<8x128xf32>
    %63 = vector.broadcast %22 : f32 to vector<8x128xf32>
    %64 = arith.mulf %62, %63 : vector<8x128xf32>
    %65 = arith.addf %52, %64 : vector<8x128xf32>
    %66 = vector.broadcast %23 : f32 to vector<8x128xf32>
    %67 = arith.mulf %62, %66 : vector<8x128xf32>
    %68 = arith.addf %56, %67 : vector<8x128xf32>
    %69 = vector.broadcast %2 : f32 to vector<8x128xf32>
    %70 = arith.mulf %42, %69 : vector<8x128xf32>
    %71 = vector.broadcast %12 : f32 to vector<8x128xf32>
    %72 = arith.addf %70, %71 : vector<8x128xf32>
    %cst_25 = arith.constant 0.000000e+00 : f32
    %73 = vector.broadcast %cst_25 : f32 to vector<8x128xf32>
    %74 = arith.maximumf %72, %73 : vector<8x128xf32>
    %75 = vector.broadcast %24 : f32 to vector<8x128xf32>
    %76 = arith.mulf %74, %75 : vector<8x128xf32>
    %77 = arith.addf %65, %76 : vector<8x128xf32>
    %78 = vector.broadcast %25 : f32 to vector<8x128xf32>
    %79 = arith.mulf %74, %78 : vector<8x128xf32>
    %80 = arith.addf %68, %79 : vector<8x128xf32>
    %81 = vector.broadcast %3 : f32 to vector<8x128xf32>
    %82 = arith.mulf %42, %81 : vector<8x128xf32>
    %83 = vector.broadcast %13 : f32 to vector<8x128xf32>
    %84 = arith.addf %82, %83 : vector<8x128xf32>
    %cst_26 = arith.constant 0.000000e+00 : f32
    %85 = vector.broadcast %cst_26 : f32 to vector<8x128xf32>
    %86 = arith.maximumf %84, %85 : vector<8x128xf32>
    %87 = vector.broadcast %26 : f32 to vector<8x128xf32>
    %88 = arith.mulf %86, %87 : vector<8x128xf32>
    %89 = arith.addf %77, %88 : vector<8x128xf32>
    %90 = vector.broadcast %27 : f32 to vector<8x128xf32>
    %91 = arith.mulf %86, %90 : vector<8x128xf32>
    %92 = arith.addf %80, %91 : vector<8x128xf32>
    %93 = vector.broadcast %4 : f32 to vector<8x128xf32>
    %94 = arith.mulf %42, %93 : vector<8x128xf32>
    %95 = vector.broadcast %14 : f32 to vector<8x128xf32>
    %96 = arith.addf %94, %95 : vector<8x128xf32>
    %cst_27 = arith.constant 0.000000e+00 : f32
    %97 = vector.broadcast %cst_27 : f32 to vector<8x128xf32>
    %98 = arith.maximumf %96, %97 : vector<8x128xf32>
    %99 = vector.broadcast %28 : f32 to vector<8x128xf32>
    %100 = arith.mulf %98, %99 : vector<8x128xf32>
    %101 = arith.addf %89, %100 : vector<8x128xf32>
    %102 = vector.broadcast %29 : f32 to vector<8x128xf32>
    %103 = arith.mulf %98, %102 : vector<8x128xf32>
    %104 = arith.addf %92, %103 : vector<8x128xf32>
    %105 = vector.broadcast %5 : f32 to vector<8x128xf32>
    %106 = arith.mulf %42, %105 : vector<8x128xf32>
    %107 = vector.broadcast %15 : f32 to vector<8x128xf32>
    %108 = arith.addf %106, %107 : vector<8x128xf32>
    %cst_28 = arith.constant 0.000000e+00 : f32
    %109 = vector.broadcast %cst_28 : f32 to vector<8x128xf32>
    %110 = arith.maximumf %108, %109 : vector<8x128xf32>
    %111 = vector.broadcast %30 : f32 to vector<8x128xf32>
    %112 = arith.mulf %110, %111 : vector<8x128xf32>
    %113 = arith.addf %101, %112 : vector<8x128xf32>
    %114 = vector.broadcast %31 : f32 to vector<8x128xf32>
    %115 = arith.mulf %110, %114 : vector<8x128xf32>
    %116 = arith.addf %104, %115 : vector<8x128xf32>
    %117 = vector.broadcast %6 : f32 to vector<8x128xf32>
    %118 = arith.mulf %42, %117 : vector<8x128xf32>
    %119 = vector.broadcast %16 : f32 to vector<8x128xf32>
    %120 = arith.addf %118, %119 : vector<8x128xf32>
    %cst_29 = arith.constant 0.000000e+00 : f32
    %121 = vector.broadcast %cst_29 : f32 to vector<8x128xf32>
    %122 = arith.maximumf %120, %121 : vector<8x128xf32>
    %123 = vector.broadcast %32 : f32 to vector<8x128xf32>
    %124 = arith.mulf %122, %123 : vector<8x128xf32>
    %125 = arith.addf %113, %124 : vector<8x128xf32>
    %126 = vector.broadcast %33 : f32 to vector<8x128xf32>
    %127 = arith.mulf %122, %126 : vector<8x128xf32>
    %128 = arith.addf %116, %127 : vector<8x128xf32>
    %129 = vector.broadcast %7 : f32 to vector<8x128xf32>
    %130 = arith.mulf %42, %129 : vector<8x128xf32>
    %131 = vector.broadcast %17 : f32 to vector<8x128xf32>
    %132 = arith.addf %130, %131 : vector<8x128xf32>
    %cst_30 = arith.constant 0.000000e+00 : f32
    %133 = vector.broadcast %cst_30 : f32 to vector<8x128xf32>
    %134 = arith.maximumf %132, %133 : vector<8x128xf32>
    %135 = vector.broadcast %34 : f32 to vector<8x128xf32>
    %136 = arith.mulf %134, %135 : vector<8x128xf32>
    %137 = arith.addf %125, %136 : vector<8x128xf32>
    %138 = vector.broadcast %35 : f32 to vector<8x128xf32>
    %139 = arith.mulf %134, %138 : vector<8x128xf32>
    %140 = arith.addf %128, %139 : vector<8x128xf32>
    %141 = vector.broadcast %8 : f32 to vector<8x128xf32>
    %142 = arith.mulf %42, %141 : vector<8x128xf32>
    %143 = vector.broadcast %18 : f32 to vector<8x128xf32>
    %144 = arith.addf %142, %143 : vector<8x128xf32>
    %cst_31 = arith.constant 0.000000e+00 : f32
    %145 = vector.broadcast %cst_31 : f32 to vector<8x128xf32>
    %146 = arith.maximumf %144, %145 : vector<8x128xf32>
    %147 = vector.broadcast %36 : f32 to vector<8x128xf32>
    %148 = arith.mulf %146, %147 : vector<8x128xf32>
    %149 = arith.addf %137, %148 : vector<8x128xf32>
    %150 = vector.broadcast %37 : f32 to vector<8x128xf32>
    %151 = arith.mulf %146, %150 : vector<8x128xf32>
    %152 = arith.addf %140, %151 : vector<8x128xf32>
    %153 = vector.broadcast %9 : f32 to vector<8x128xf32>
    %154 = arith.mulf %42, %153 : vector<8x128xf32>
    %155 = vector.broadcast %19 : f32 to vector<8x128xf32>
    %156 = arith.addf %154, %155 : vector<8x128xf32>
    %cst_32 = arith.constant 0.000000e+00 : f32
    %157 = vector.broadcast %cst_32 : f32 to vector<8x128xf32>
    %158 = arith.maximumf %156, %157 : vector<8x128xf32>
    %159 = vector.broadcast %38 : f32 to vector<8x128xf32>
    %160 = arith.mulf %158, %159 : vector<8x128xf32>
    %161 = arith.addf %149, %160 : vector<8x128xf32>
    %162 = vector.broadcast %39 : f32 to vector<8x128xf32>
    %163 = arith.mulf %158, %162 : vector<8x128xf32>
    %164 = arith.addf %152, %163 : vector<8x128xf32>
    %c0_33 = arith.constant 0 : index
    %c0_34 = arith.constant 0 : index
    %c0_35 = arith.constant 0 : index
    %165 = vector.load %arg6[%c0_33, %c0_34, %c0_35] : memref<2x8x128xf32, #tpu.memory_space<vmem>>, vector<1x8x128xf32>
    %166 = vector.shape_cast %165 : vector<1x8x128xf32> to vector<8x128xf32>
    %167 = vector.shape_cast %161 : vector<8x128xf32> to vector<1x8x128xf32>
    tpu.vector_store %arg6[%c0_33, %c0_34, %c0_35], %167 {strides = array<i32>} : memref<2x8x128xf32, #tpu.memory_space<vmem>>, vector<1x8x128xf32>,
    %c1_36 = arith.constant 1 : index
    %c0_37 = arith.constant 0 : index
    %c0_38 = arith.constant 0 : index
    %168 = vector.load %arg6[%c1_36, %c0_37, %c0_38] : memref<2x8x128xf32, #tpu.memory_space<vmem>>, vector<1x8x128xf32>
    %169 = vector.shape_cast %168 : vector<1x8x128xf32> to vector<8x128xf32>
    %170 = vector.shape_cast %164 : vector<8x128xf32> to vector<1x8x128xf32>
    tpu.vector_store %arg6[%c1_36, %c0_37, %c0_38], %170 {strides = array<i32>} : memref<2x8x128xf32, #tpu.memory_space<vmem>>, vector<1x8x128xf32>,
    return
  }
  func.func @transform_0(%arg0: i32) -> (i32, i32) {
    %c0_i32 = arith.constant 0 : i32
    %c0_i32_0 = arith.constant 0 : i32
    return %arg0, %c0_i32 : i32, i32
  }
  func.func @transform_1(%arg0: i32) -> i32 {
    %c0_i32 = arith.constant 0 : i32
    %c0_i32_0 = arith.constant 0 : i32
    return %c0_i32 : i32
  }
  func.func @transform_2(%arg0: i32) -> i32 {
    %c0_i32 = arith.constant 0 : i32
    %c0_i32_0 = arith.constant 0 : i32
    return %c0_i32 : i32
  }
  func.func @transform_3(%arg0: i32) -> i32 {
    %c0_i32 = arith.constant 0 : i32
    %c0_i32_0 = arith.constant 0 : i32
    return %c0_i32 : i32
  }
  func.func @transform_4(%arg0: i32) -> i32 {
    %c0_i32 = arith.constant 0 : i32
    %c0_i32_0 = arith.constant 0 : i32
    return %c0_i32 : i32
  }
  func.func @transform_5(%arg0: i32) -> (i32, i32, i32) {
    %c0_i32 = arith.constant 0 : i32
    %c0_i32_0 = arith.constant 0 : i32
    %c0_i32_1 = arith.constant 0 : i32
    return %c0_i32, %arg0, %c0_i32_0 : i32, i32, i32
  }
}

</mosaic_0001>

<bundles_post_ra>
// kernel: tpu_custom_call.1
= control target key start
LH: loop header
LB: loop body
LE: loop exit
PB: predicated region body
PF: predicated region fallthrough
CT: control target
= control target key end

     0   :  { %10 = vsyncpa [#allocation3], 0  ;;  %s616_s0 = inlined_call_operand.hbm [shape: f32[8,128], index: 0, kind: input, shape index: {}]   ;;  %s617_s1 = inlined_call_operand.vmem [shape: f32[10], index: 1, kind: input, shape index: {}]   ;;  %s618_s2 = inlined_call_operand.vmem [shape: f32[10], index: 2, kind: input, shape index: {}]   ;;  %s619_s3 = inlined_call_operand.vmem [shape: f32[20], index: 3, kind: input, shape index: {}]   ;;  %s620_s4 = inlined_call_operand.vmem [shape: f32[2], index: 4, kind: input, shape index: {}]   ;;  %s621_s5 = inlined_call_operand.hbm [shape: f32[2,8,128], index: 5, kind: output, shape index: {}]  }
   0x1   :  { %11 = vsyncpa [#allocation5], 0 }
   0x2   :  { %12 = vsyncpa [#allocation8], 0 }
   0x3   :  { %13 = vsyncpa [#allocation11], 0  ;;  %s41_s20 = sshll.u32 %s618_s2, 4  ;;  %s42_s20 = int_to_ptr.vmem [resolvable:$true] %s41_s20 }
   0x4   :  { %14 = vsyncpa [#allocation4], 0  ;;  %s305_s21 = scalar_lea.vmem %s42_s20, 16  ;;  %p310_p1 = scmp.lt.s32.totalorder %s42_s20, %s42_s20 }
   0x5   :  { %p306_p0 = scmp.ne.s32.totalorder %s42_s20, %s305_s21  ;;  %p311_p2 = scmp.lt.s32.totalorder %s305_s21, %s305_s21 }
   0x7   :  { %p312_p3 = por %p311_p2, %p310_p1 }
   0x9   :  { %p313_p4 = pnand %p312_p3, %p306_p0 }
   0xb   :  { %316 = shalt.err (!%p313_p4)
}
   0xc   :  { %s407_s22 = smov [#allocation7]   ;;  %s408_s23 = smov [#allocation2]  }
   0xd   :  { %44 = dma.vmem_to_smem %s42_s20, 16, %s407_s22, [#allocation8]  }
   0xe   :  { %s21_s24 = sshll.u32 %s408_s23, 4  ;;  %s31_s27 = sshll.u32 %s617_s1, 4  ;;  %s22_s24 = int_to_ptr.vmem [resolvable:$true] %s21_s24  ;;  %s32_s27 = int_to_ptr.vmem [resolvable:$true] %s31_s27 }
   0xf   :  { %s317_s29 = scalar_lea.hbm %s616_s0, 128 }
  0x10   :  { %p318_p5 = scmp.ne.s32.totalorder %s616_s0, %s317_s29  ;;  %p321_p6 = scmp.lt.u32.totalorder %s317_s29, %s616_s0 }
  0x12   :  { %p323_p7 = pnand %p321_p6, %p318_p5 }
  0x14   :  { %326 = shalt.err (!%p323_p7)
}
  0x15   :  { %s327_s9 = scalar_lea.vmem %s22_s24, 128  ;;  %p332_p9 = scmp.lt.s32.totalorder %s22_s24, %s22_s24 }
  0x16   :  { %p328_p8 = scmp.ne.s32.totalorder %s22_s24, %s327_s9  ;;  %p333_p10 = scmp.lt.s32.totalorder %s327_s9, %s327_s9 }
  0x18   :  { %p334_p11 = por %p333_p10, %p332_p9 }
  0x1a   :  { %p335_p12 = pnand %p334_p11, %p328_p8 }
  0x1c   :  { %338 = shalt.err (!%p335_p12)
}
  0x1d   :  { %24 = dma.hbm_to_vmem [thread:$0]  %s616_s0, 128, %s22_s24, [#allocation3]  }
  0x1e   :  { %s51_s13 = sshll.u32 %s619_s3, 4  ;;  %s339_s14 = scalar_lea.vmem %s32_s27, 16  ;;  %s52_s13 = int_to_ptr.vmem [resolvable:$true] %s51_s13 }
  0x1f   :  { %p340_p13 = scmp.ne.s32.totalorder %s32_s27, %s339_s14  ;;  %p344_p0 = scmp.lt.s32.totalorder %s32_s27, %s32_s27 }
  0x20   :  { %p345_p1 = scmp.lt.s32.totalorder %s339_s14, %s339_s14 }
  0x22   :  { %p346_p2 = por %p345_p1, %p344_p0 }
  0x24   :  { %p347_p3 = pnand %p346_p2, %p340_p13 }
  0x26   :  { %350 = shalt.err (!%p347_p3)
}
  0x27   :  { %s409_s15 = smov [#allocation6]   ;;  %s351_s16 = scalar_lea.vmem %s52_s13, 16 }
  0x28   :  { %34 = dma.vmem_to_smem %s32_s27, 16, %s409_s15, [#allocation5]  }
  0x29   :  { %p352_p4 = scmp.ne.s32.totalorder %s52_s13, %s351_s16  ;;  %p356_p5 = scmp.lt.s32.totalorder %s52_s13, %s52_s13 }
  0x2a   :  { %p357_p6 = scmp.lt.s32.totalorder %s351_s16, %s351_s16 }
  0x2c   :  { %p358_p7 = por %p357_p6, %p356_p5 }
  0x2e   :  { %p359_p8 = pnand %p358_p7, %p352_p4 }
  0x30   :  { %362 = shalt.err (!%p359_p8)
}
  0x31   :  { %s410_s0 = smov [#allocation9]   ;;  %s61_s18 = sshll.u32 %s620_s4, 4  ;;  %s62_s18 = int_to_ptr.vmem [resolvable:$true] %s61_s18 }
  0x32   :  { %54 = dma.vmem_to_smem %s52_s13, 16, %s410_s0, [#allocation8]  }
  0x33   :  { %s363_s19 = scalar_lea.vmem %s62_s18, 16  ;;  %p368_p10 = scmp.lt.s32.totalorder %s62_s18, %s62_s18 }
  0x34   :  { %p364_p9 = scmp.ne.s32.totalorder %s62_s18, %s363_s19  ;;  %p369_p11 = scmp.lt.s32.totalorder %s363_s19, %s363_s19 }
  0x36   :  { %p370_p12 = por %p369_p11, %p368_p10 }
  0x38   :  { %p371_p13 = pnand %p370_p12, %p364_p9 }
  0x3a   :  { %374 = shalt.err (!%p371_p13)
}
  0x3b   :  { %s411_s20 = smov [#allocation10]  }
  0x3c   :  { %64 = dma.vmem_to_smem %s62_s18, 16, %s411_s20, [#allocation11]  }
  0x3d   :  { %397 = dma.done.wait [#allocation3], 128  }
  0x3e   :  { %398 = vsyncadd [#allocation3], 4294967168 }
  0x3f   :  { %399 = dma.done.wait [#allocation5], 16  }
  0x40   :  { %400 = vsyncadd [#allocation5], 4294967280 }
  0x41   :  { %401 = dma.done.wait [#allocation8], 32  }
  0x42   :  { %402 = vsyncadd [#allocation8], 4294967264 }
  0x43   :  { %403 = dma.done.wait [#allocation11], 16  }
  0x44   :  { %404 = vsyncadd [#allocation11], 4294967280 }
  0x45   :  { %80 = sfence }
  0x46   :  { %s81_s4 = sld [smem:[#allocation6]]  ;;  %s259_s21 = sld [smem:[#allocation6 + $0x1]]  ;;  %v477_v0 = vld [vmem:[#allocation2] sm:$0xff] }
  0x47   :  { %s260_s22 = sld [smem:[#allocation6 + $0x2]]  ;;  %s261_s23 = sld [smem:[#allocation6 + $0x3]] }
  0x48   :  { %s469_s24 = sld [smem:[#allocation6 + $0x4]]  ;;  %s471_s25 = sld [smem:[#allocation6 + $0x5]] }
  0x49   :  { %s473_s26 = sld [smem:[#allocation6 + $0x6]]  ;;  %s475_s27 = sld [smem:[#allocation6 + $0x7]] }
  0x4a   :  { %s91_s2 = sld [smem:[#allocation7]]  ;;  %s268_s28 = sld [smem:[#allocation7 + $0x1]] }
  0x4b   :  { %s479_s29 = sld [smem:[#allocation7 + $0x2]]  ;;  %s481_s30 = sld [smem:[#allocation7 + $0x3]] }
  0x4c   :  { %v124_v1 = vstv %s81_s4  ;;  %v137_v2 = vstv %s259_s21  ;;  %s483_s6 = sld [smem:[#allocation7 + $0x4]]  ;;  %s485_s7 = sld [smem:[#allocation7 + $0x5]] }
  0x4d   :  { %v148_v3 = vstv %s260_s22  ;;  %v159_v4 = vstv %s261_s23  ;;  %s487_s8 = sld [smem:[#allocation6 + $0x8]]  ;;  %v125_v5 = vmul.f32 %v124_v1, %v477_v0  ;;  %v138_v6 = vmul.f32 %v137_v2, %v477_v0  ;;  %s492_s9 = sld [smem:[#allocation6 + $0x9]] }
  0x4e   :  { %v170_v7 = vstv %s469_s24  ;;  %s494_s1 = sld [smem:[#allocation7 + $0x6]]  ;;  %s496_s10 = sld [smem:[#allocation9]]  ;;  %v149_v8 = vmul.f32 %v148_v3, %v477_v0  ;;  %v160_v9 = vmul.f32 %v159_v4, %v477_v0  ;;  %v181_v10 = vstv %s471_s25 }
  0x4f   :  { %s498_s11 = sld [smem:[#allocation9 + $0x2]]  ;;  %s503_s12 = sld [smem:[#allocation9 + $0x4]]  ;;  %v171_v13 = vmul.f32 %v170_v7, %v477_v0  ;;  %v182_v19 = vmul.f32 %v181_v10, %v477_v0  ;;  %v192_v20 = vstv %s473_s26  ;;  %v203_v25 = vstv %s475_s27 }
  0x50   :  { %s505_s13 = sld [smem:[#allocation9 + $0x6]]  ;;  %v126_v11 = vstv %s91_s2  ;;  %v139_v12 = vstv %s268_s28  ;;  %s514_s14 = sld [smem:[#allocation7 + $0x7]]  ;;  %v193_v29 = vmul.f32 %v192_v20, %v477_v0  ;;  %v204_v40 = vmul.f32 %v203_v25, %v477_v0 }
  0x51   :  { %v508_v14 = vadd.f32 %v126_v11, %v125_v5  ;;  %v510_v15 = vadd.f32 %v139_v12, %v138_v6  ;;  %v150_v16 = vstv %s479_s29  ;;  %v161_v17 = vstv %s481_s30  ;;  %s516_s15 = sld [smem:[#allocation9 + $0x8]]  ;;  %s523_s0 = sld [smem:[#allocation9 + $0xa]] }
  0x52   :  { %v172_v18 = vstv %s483_s6  ;;  %s521_s16 = sld [smem:[#allocation7 + $0x8]]  ;;  %v526_v22 = vadd.f32 %v150_v16, %v149_v8  ;;  %v528_v23 = vadd.f32 %v161_v17, %v160_v9  ;;  %v183_v24 = vstv %s485_s7  ;;  %s534_s17 = sld [smem:[#allocation9 + $0x1]] }
  0x53   :  { %v128_v21 = vmax.f32 %v508_v14, 0.0  ;;  %s531_s3 = sld [smem:[#allocation10]]  ;;  %v141_v27 = vmax.f32 %v510_v15, 0.0  ;;  %v538_v28 = vadd.f32 %v172_v18, %v171_v13  ;;  %s541_s18 = sld [smem:[#allocation9 + $0x3]]  ;;  %v546_v31 = vadd.f32 %v183_v24, %v182_v19 }
  0x54   :  { %v129_v26 = vstv %s496_s10  ;;  %s543_s19 = sld [smem:[#allocation7 + $0x9]]  ;;  %v214_v32 = vstv %s487_s8  ;;  %v225_v33 = vstv %s492_s9  ;;  %s550_s20 = sld [smem:[#allocation9 + $0x5]]  ;;  %v152_v35 = vmax.f32 %v526_v22, 0.0 }
  0x55   :  { %v142_v30 = vstv %s498_s11  ;;  %v130_v34 = vmul.f32 %v129_v26, %v128_v21  ;;  %v163_v36 = vmax.f32 %v528_v23, 0.0  ;;  %v194_v37 = vstv %s494_s1  ;;  %s555_s4 = sld [smem:[#allocation9 + $0x7]]  ;;  %s557_s21 = sld [smem:[#allocation9 + $0xc]] }
  0x56   :  { %v153_v38 = vstv %s503_s12  ;;  %v164_v39 = vstv %s505_s13  ;;  %v143_v41 = vmul.f32 %v142_v30, %v141_v27  ;;  %v174_v42 = vmax.f32 %v538_v28, 0.0  ;;  %s565_s22 = sld [smem:[#allocation9 + $0x9]]  ;;  %s569_s24 = sld [smem:[#allocation9 + $0xe]] }
  0x57   :  { %v215_v43 = vmul.f32 %v214_v32, %v477_v0  ;;  %v226_v44 = vmul.f32 %v225_v33, %v477_v0  ;;  %s567_s23 = sld [smem:[#allocation10 + $0x1]]  ;;  %v175_v46 = vstv %s516_s15  ;;  %v195_v47 = vadd.f32 %v194_v37, %v193_v29  ;;  %s575_s25 = sld [smem:[#allocation9 + $0xb]] }
  0x58   :  { %v205_v48 = vstv %s514_s14  ;;  %v154_v50 = vmul.f32 %v153_v38, %v152_v35  ;;  %v165_v51 = vmul.f32 %v164_v39, %v163_v36  ;;  %v185_v52 = vmax.f32 %v546_v31, 0.0  ;;  %s577_s26 = sld [smem:[#allocation9 + $0x10]]  ;;  %s583_s27 = sld [smem:[#allocation9 + $0xd]] }
  0x59   :  { %v131_v45 = vstv %s531_s3  ;;  %v186_v53 = vstv %s523_s0  ;;  %v216_v54 = vstv %s521_s16  ;;  %v133_v55 = vstv %s534_s17  ;;  %s585_s2 = sld [smem:[#allocation9 + $0x12]]  ;;  %s589_s28 = sld [smem:[#allocation9 + $0xf]] }
  0x5a   :  { %v132_v49 = vadd.f32 %v131_v45, %v130_v34  ;;  %v145_v56 = vstv %s541_s18  ;;  %v176_v58 = vmul.f32 %v175_v46, %v174_v42  ;;  %v206_v59 = vadd.f32 %v205_v48, %v204_v40  ;;  %s594_s29 = sld [smem:[#allocation9 + $0x11]]  ;;  %s295_s30 = sld [smem:[#allocation9 + $0x13]] }
  0x5b   :  { %v134_v60 = vmul.f32 %v133_v55, %v128_v21  ;;  %v196_v61 = vmax.f32 %v195_v47, 0.0  ;;  %v227_v62 = vstv %s543_s19  ;;  %v146_v63 = vmul.f32 %v145_v56, %v141_v27  ;;  %s412_s6 = smov [#allocation12]  }
  0x5c   :  { %v144_v57 = vadd.f32 %v143_v41, %v132_v49  ;;  %v156_v0 = vstv %s550_s20  ;;  %v217_v2 = vadd.f32 %v216_v54, %v215_v43  ;;  %v167_v4 = vstv %s555_s4  ;;  %s244_s7 = sshll.u32 %s412_s6, 4  ;;  %s245_s7 = int_to_ptr.vmem [resolvable:$true] %s244_s7 }
  0x5d   :  { %v135_v3 = vstv %s567_s23  ;;  %v187_v5 = vmul.f32 %v186_v53, %v185_v52  ;;  %v197_v6 = vstv %s557_s21  ;;  %v157_v8 = vmul.f32 %v156_v0, %v152_v35  ;;  %s375_s8 = scalar_lea.vmem %s245_s7, 256  ;;  %p380_p1 = scmp.lt.s32.totalorder %s245_s7, %s245_s7 }
  0x5e   :  { %v155_v1 = vadd.f32 %v154_v50, %v144_v57  ;;  %v136_v7 = vadd.f32 %v135_v3, %v134_v60  ;;  %v207_v10 = vmax.f32 %v206_v59, 0.0  ;;  %v228_v11 = vadd.f32 %v227_v62, %v226_v44  ;;  %p376_p0 = scmp.ne.s32.totalorder %s245_s7, %s375_s8  ;;  %p381_p2 = scmp.lt.s32.totalorder %s375_s8, %s375_s8 }
  0x5f   :  { %v178_v12 = vstv %s565_s22  ;;  %v208_v13 = vstv %s569_s24  ;;  %v168_v15 = vmul.f32 %v167_v4, %v163_v36  ;;  %v198_v17 = vmul.f32 %v197_v6, %v196_v61 }
  0x60   :  { %v166_v9 = vadd.f32 %v165_v51, %v155_v1  ;;  %v147_v14 = vadd.f32 %v146_v63, %v136_v7  ;;  %v218_v18 = vmax.f32 %v217_v2, 0.0  ;;  %v189_v19 = vstv %s575_s25  ;;  %p382_p3 = por %p381_p2, %p380_p1 }
  0x61   :  { %v219_v20 = vstv %s577_s26  ;;  %v179_v22 = vmul.f32 %v178_v12, %v174_v42  ;;  %v209_v24 = vmul.f32 %v208_v13, %v207_v10  ;;  %v229_v25 = vmax.f32 %v228_v11, 0.0 }
  0x62   :  { %v177_v16 = vadd.f32 %v176_v58, %v166_v9  ;;  %v158_v21 = vadd.f32 %v157_v8, %v147_v14  ;;  %v200_v26 = vstv %s583_s27  ;;  %v230_v27 = vstv %s585_s2  ;;  %p383_p4 = pnand %p382_p3, %p376_p0 }
  0x63   :  { %v190_v29 = vmul.f32 %v189_v19, %v185_v52  ;;  %v220_v31 = vmul.f32 %v219_v20, %v218_v18  ;;  %v211_v32 = vstv %s589_s28  ;;  %v201_v34 = vmul.f32 %v200_v26, %v196_v61 }
  0x64   :  { %v188_v23 = vadd.f32 %v187_v5, %v177_v16  ;;  %v169_v28 = vadd.f32 %v168_v15, %v158_v21  ;;  %v231_v36 = vmul.f32 %v230_v27, %v229_v25  ;;  %v222_v37 = vstv %s594_s29 }
  0x65   :  { %v212_v39 = vmul.f32 %v211_v32, %v207_v10  ;;  %v233_v41 = vstv %s295_s30  ;;  %v223_v43 = vmul.f32 %v222_v37, %v218_v18 }
  0x66   :  { %v199_v30 = vadd.f32 %v198_v17, %v188_v23  ;;  %v180_v33 = vadd.f32 %v179_v22, %v169_v28  ;;  %v234_v46 = vmul.f32 %v233_v41, %v229_v25 }
  0x68   :  { %v210_v35 = vadd.f32 %v209_v24, %v199_v30  ;;  %v191_v38 = vadd.f32 %v190_v29, %v180_v33 }
  0x6a   :  { %v221_v40 = vadd.f32 %v220_v31, %v210_v35  ;;  %v202_v42 = vadd.f32 %v201_v34, %v191_v38 }
  0x6c   :  { %v232_v44 = vadd.f32 %v231_v36, %v221_v40  ;;  %v213_v45 = vadd.f32 %v212_v39, %v202_v42 }
  0x6e   :  { %236 = vst [vmem:[#allocation12] sm:$0xff] %v232_v44  ;;  %v224_v47 = vadd.f32 %v223_v43, %v213_v45 }
  0x70   :  { %v235_v48 = vadd.f32 %v234_v46, %v224_v47 }
  0x72   :  { %238 = vst [vmem:[#allocation12 + $0x8] sm:$0xff] %v235_v48 }
  0x73   :  { %386 = shalt.err (!%p383_p4)
}
  0x74   :  { %s387_s10 = scalar_lea.hbm %s621_s5, 256 }
  0x75   :  { %p388_p5 = scmp.ne.s32.totalorder %s621_s5, %s387_s10  ;;  %p391_p6 = scmp.lt.u32.totalorder %s387_s10, %s621_s5 }
  0x77   :  { %p393_p7 = pnand %p391_p6, %p388_p5 }
  0x79   :  { %396 = shalt.err (!%p393_p7)
}
  0x7a   :  { %s413_s15 = smov 128   ;;  %s414_s16 = smov 8  }
  0x7b   :  { %250 = dma.vmem_to_hbm [thread:$0]  %s245_s7, 256, %s621_s5, [#allocation4], %s413_s15, %s413_s15, %s414_s16  }
  0x7c   :  { %405 = dma.done.wait [#allocation4], 256  }
  0x7d   :  { %406 = vsyncadd [#allocation4], 4294967040 }
  0x7e   :  { %254 = vsyncpa [#allocation3], 1 }
  0x7f   :  { %255 = vsyncpa [#allocation4], 1 }
  0x80   :  { %256 = vsyncpa [#allocation5], 1 }
  0x81   :  { %257 = vsyncpa [#allocation8], 1 }
  0x82   :  { %258 = vsyncpa [#allocation11], 1 }

</bundles_post_ra>
